<compile_context>
chip_gen: v7x
topology: tpu7x:2x2x1
jax: 0.10.0
libtpu: 0.0.40
codegen_flags: <defaults>
</compile_context>

<pallas_src>
import jax
import jax.numpy as jnp
from jax.experimental import pallas as pl
from jax.experimental.pallas import tpu as pltpu

TARGET_BLOCK_BYTES = 2 << 20     # ~2 MiB per stream per block
FALLBACK_LANES = 512


def _round_up(a, b):
    return (a + b - 1) // b * b


def _choose_lanes(total):
    """Pick a lane width that divides `total` (zero-copy, zero-pad reshape)
    while being a multiple of 128 (lane-dense unmasked stores)."""
    for lanes in (512, 256, 128, 1024, 640, 384, 896, 768):
        if total % lanes == 0:
            return lanes, 0
    # Rare fallback: pad the flat tail up to a multiple of FALLBACK_LANES.
    pad = _round_up(total, FALLBACK_LANES) - total
    return FALLBACK_LANES, pad


def _scale_beta_kernel(scale_ref, beta_ref, x_ref, code_ref, quant_ref, dequant_ref):
    # scale / beta are shape-(1,) scalars in SMEM.
    scale = scale_ref[0]
    beta = beta_ref[0]

    x = x_ref[...]
    # Exact divide: matches the PyTorch divide bit-for-bit (no reciprocal
    # hoist -> no half-integer round() flips).  Divide cost is hidden in the
    # HBM DMA shadow for this memory-bound kernel.
    code = (x - beta) / scale
    quant = jnp.round(code)           # round-half-to-even, same as torch.round
    dequant = quant * scale + beta

    code_ref[...] = code
    quant_ref[...] = quant
    dequant_ref[...] = dequant


def scale_beta_forward(x_nchw, scale, beta):
    """x_nchw: (N, C, H, W) float32. scale, beta: shape (1,) float32.

    Returns (code, quant, dequant), each shaped (N, C, H, W).
    """
    N, C, H, W = x_nchw.shape
    total = N * C * H * W
    dtype = x_nchw.dtype
    itemsize = jnp.dtype(dtype).itemsize

    lanes, pad = _choose_lanes(total)

    x_flat = x_nchw.reshape(-1)
    if pad:
        # Fallback only (shape with no 128-multiple divisor): costs one extra
        # copy of the input; avoided entirely for typical NCHW shapes.
        x_flat = jnp.pad(x_flat, (0, pad))
    rows = x_flat.shape[0] // lanes
    x2d = x_flat.reshape(rows, lanes)

    # Rows per block: target ~2 MiB blocks, sublane-aligned (f32 -> 8).
    tr_target = max(8, TARGET_BLOCK_BYTES // (lanes * itemsize))
    if rows <= 16:
        tr = rows                                     # single full-extent block
    else:
        # Keep at least 2 grid steps so v7x's two TensorCores both stream.
        tr = min(_round_up(tr_target, 8), _round_up(pl.cdiv(rows, 2), 8))

    grid = (pl.cdiv(rows, tr),)                       # partial tail block OK
    vmem_blk = pl.BlockSpec((tr, lanes), lambda i: (i, 0))
    smem_spec = pl.BlockSpec(memory_space=pltpu.MemorySpace.SMEM)
    out_shape2d = jax.ShapeDtypeStruct((rows, lanes), dtype)

    code2d, quant2d, dequant2d = pl.pallas_call(
        _scale_beta_kernel,
        out_shape=(out_shape2d, out_shape2d, out_shape2d),
        grid=grid,
        in_specs=[smem_spec, smem_spec, vmem_blk],
        out_specs=(vmem_blk, vmem_blk, vmem_blk),
        compiler_params=pltpu.CompilerParams(
            dimension_semantics=("parallel",),
            vmem_limit_bytes=32 << 20,
        ),
    )(scale, beta, x2d)

    if pad:
        def unflatten(a):
            return a.reshape(-1)[:total].reshape(N, C, H, W)
    else:
        def unflatten(a):
            return a.reshape(N, C, H, W)

    return unflatten(code2d), unflatten(quant2d), unflatten(dequant2d)


def _reference(x, scale, beta):
    code = (x - beta[0]) / scale[0]
    quant = jnp.round(code)
    dequant = quant * scale[0] + beta[0]
    return code, quant, dequant


if __name__ == "__main__":
    key = jax.random.PRNGKey(0)
    N, C, H, W = 2, 4, 16, 16
    x = jax.random.normal(key, (N, C, H, W), dtype=jnp.float32) * 3.0 + 0.5

    # Case 1: deterministic parameter init matching ScaleBeta_T.__init__.
    scale = jnp.array([1.0], dtype=jnp.float32)
    beta = jnp.array([0.0], dtype=jnp.float32)
    code, quant, dequant = scale_beta_forward(x, scale, beta)
    jax.block_until_ready((code, quant, dequant))

    ref_code, ref_quant, ref_dequant = _reference(x, scale, beta)
    assert jnp.allclose(code, ref_code, atol=1e-6)
    assert jnp.allclose(quant, ref_quant, atol=1e-6)
    assert jnp.allclose(dequant, ref_dequant, atol=1e-6)

    # Case 2: non-trivial, non-power-of-two params (post init_data style);
    # kernel uses the exact divide, so it matches the reference divide exactly.
    scale2 = jnp.array([0.3], dtype=jnp.float32)
    beta2 = jnp.array([0.5], dtype=jnp.float32)
    code2, quant2, dequant2 = scale_beta_forward(x, scale2, beta2)
    jax.block_until_ready((code2, quant2, dequant2))

    ref_code2, ref_quant2, ref_dequant2 = _reference(x, scale2, beta2)
    assert jnp.allclose(code2, ref_code2, atol=1e-6)
    assert jnp.allclose(quant2, ref_quant2, atol=1e-6)
    assert jnp.allclose(dequant2, ref_dequant2, atol=1e-6)

    print("KERNEL_OK")
</pallas_src>

<mosaic_0001>
module attributes {stable_mosaic.version = 11 : i64} {
  func.func @_scale_beta_kernel(%arg0: i32, %arg1: memref<1xf32, #tpu.memory_space<smem>>, %arg2: memref<1xf32, #tpu.memory_space<smem>>, %arg3: memref<4x512xf32, #tpu.memory_space<vmem>>, %arg4: memref<4x512xf32, #tpu.memory_space<vmem>>, %arg5: memref<4x512xf32, #tpu.memory_space<vmem>>, %arg6: memref<4x512xf32, #tpu.memory_space<vmem>>) attributes {dimension_semantics = [#tpu.dimension_semantics<parallel>], iteration_bounds = array<i64: 1>, scalar_prefetch = 0 : i64, scratch_operands = 0 : i64, tpu.core_type = #tpu.core_type<tc>, window_params = [{transform_indices = @transform_0, window_bounds = array<i64: 1>}, {transform_indices = @transform_1, window_bounds = array<i64: 1>}, {transform_indices = @transform_2, window_bounds = array<i64: 4, 512>}, {transform_indices = @transform_3, window_bounds = array<i64: 4, 512>}, {transform_indices = @transform_4, window_bounds = array<i64: 4, 512>}, {transform_indices = @transform_5, window_bounds = array<i64: 4, 512>}]} {
    %c0 = arith.constant 0 : index
    %0 = memref.load %arg1[%c0] : memref<1xf32, #tpu.memory_space<smem>>
    %c0_0 = arith.constant 0 : index
    %1 = memref.load %arg2[%c0_0] : memref<1xf32, #tpu.memory_space<smem>>
    %c0_1 = arith.constant 0 : index
    %c0_2 = arith.constant 0 : index
    %2 = vector.load %arg3[%c0_1, %c0_2] : memref<4x512xf32, #tpu.memory_space<vmem>>, vector<4x512xf32>
    %3 = vector.broadcast %1 : f32 to vector<4x512xf32>
    %4 = arith.subf %2, %3 : vector<4x512xf32>
    %5 = vector.broadcast %0 : f32 to vector<4x512xf32>
    %6 = arith.divf %4, %5 : vector<4x512xf32>
    %7 = math.roundeven %6 : vector<4x512xf32>
    %8 = vector.broadcast %0 : f32 to vector<4x512xf32>
    %9 = arith.mulf %7, %8 : vector<4x512xf32>
    %10 = vector.broadcast %1 : f32 to vector<4x512xf32>
    %11 = arith.addf %9, %10 : vector<4x512xf32>
    %c0_3 = arith.constant 0 : index
    %c0_4 = arith.constant 0 : index
    %12 = vector.load %arg4[%c0_3, %c0_4] : memref<4x512xf32, #tpu.memory_space<vmem>>, vector<4x512xf32>
    tpu.vector_store %arg4[%c0_3, %c0_4], %6 {strides = array<i32>} : memref<4x512xf32, #tpu.memory_space<vmem>>, vector<4x512xf32>,
    %c0_5 = arith.constant 0 : index
    %c0_6 = arith.constant 0 : index
    %13 = vector.load %arg5[%c0_5, %c0_6] : memref<4x512xf32, #tpu.memory_space<vmem>>, vector<4x512xf32>
    tpu.vector_store %arg5[%c0_5, %c0_6], %7 {strides = array<i32>} : memref<4x512xf32, #tpu.memory_space<vmem>>, vector<4x512xf32>,
    %c0_7 = arith.constant 0 : index
    %c0_8 = arith.constant 0 : index
    %14 = vector.load %arg6[%c0_7, %c0_8] : memref<4x512xf32, #tpu.memory_space<vmem>>, vector<4x512xf32>
    tpu.vector_store %arg6[%c0_7, %c0_8], %11 {strides = array<i32>} : memref<4x512xf32, #tpu.memory_space<vmem>>, vector<4x512xf32>,
    return
  }
  func.func @transform_0(%arg0: i32) -> i32 {
    %c0_i32 = arith.constant 0 : i32
    %c0_i32_0 = arith.constant 0 : i32
    return %c0_i32 : i32
  }
  func.func @transform_1(%arg0: i32) -> i32 {
    %c0_i32 = arith.constant 0 : i32
    %c0_i32_0 = arith.constant 0 : i32
    return %c0_i32 : i32
  }
  func.func @transform_2(%arg0: i32) -> (i32, i32) {
    %c0_i32 = arith.constant 0 : i32
    %c0_i32_0 = arith.constant 0 : i32
    return %arg0, %c0_i32 : i32, i32
  }
  func.func @transform_3(%arg0: i32) -> (i32, i32) {
    %c0_i32 = arith.constant 0 : i32
    %c0_i32_0 = arith.constant 0 : i32
    return %arg0, %c0_i32 : i32, i32
  }
  func.func @transform_4(%arg0: i32) -> (i32, i32) {
    %c0_i32 = arith.constant 0 : i32
    %c0_i32_0 = arith.constant 0 : i32
    return %arg0, %c0_i32 : i32, i32
  }
  func.func @transform_5(%arg0: i32) -> (i32, i32) {
    %c0_i32 = arith.constant 0 : i32
    %c0_i32_0 = arith.constant 0 : i32
    return %arg0, %c0_i32 : i32, i32
  }
}

</mosaic_0001>

<bundles_post_ra>
// kernel: tpu_custom_call.1
= control target key start
LH: loop header
LB: loop body
LE: loop exit
PB: predicated region body
PF: predicated region fallthrough
CT: control target
= control target key end

     0   :  { %13 = vsyncpa [#allocation5], 0  ;;  %s298_s0 = inlined_call_operand.<no memory space> [shape: f32[1], index: 0, kind: input, shape index: {}]   ;;  %s299_s1 = inlined_call_operand.<no memory space> [shape: f32[1], index: 1, kind: input, shape index: {}]   ;;  %s300_s2 = inlined_call_operand.hbm [shape: f32[4,512], index: 2, kind: input, shape index: {}]   ;;  %s301_s3 = inlined_call_operand.hbm [shape: f32[4,512], index: 3, kind: output, shape index: {0}]   ;;  %s302_s4 = inlined_call_operand.hbm [shape: f32[4,512], index: 4, kind: output, shape index: {1}]   ;;  %s303_s5 = inlined_call_operand.hbm [shape: f32[4,512], index: 5, kind: output, shape index: {2}]  }
   0x1   :  { %14 = vsyncpa [#allocation6], 0 }
   0x2   :  { %15 = vsyncpa [#allocation9], 0  ;;  %s200_s18 = smov [#allocation4]   ;;  %s106_s22 = scalar_lea.hbm %s300_s2, 256 }
   0x3   :  { %s26_s19 = sshll.u32 %s200_s18, 4  ;;  %p107_p0 = scmp.ne.s32.totalorder %s300_s2, %s106_s22  ;;  %s27_s19 = int_to_ptr.vmem [resolvable:$true] %s26_s19 }
   0x4   :  { %p110_p1 = scmp.lt.u32.totalorder %s106_s22, %s300_s2 }
   0x6   :  { %p112_p2 = pnand %p110_p1, %p107_p0 }
   0x8   :  { %115 = shalt.err (!%p112_p2)
}
   0x9   :  { %s116_s27 = scalar_lea.vmem %s27_s19, 256  ;;  %p121_p4 = scmp.lt.s32.totalorder %s27_s19, %s27_s19 }
   0xa   :  { %p117_p3 = scmp.ne.s32.totalorder %s27_s19, %s116_s27  ;;  %p122_p5 = scmp.lt.s32.totalorder %s116_s27, %s116_s27 }
   0xc   :  { %p123_p6 = por %p122_p5, %p121_p4 }
   0xe   :  { %p124_p7 = pnand %p123_p6, %p117_p3 }
  0x10   :  { %127 = shalt.err (!%p124_p7)
}
  0x11   :  { %29 = dma.hbm_to_vmem [thread:$0]  %s300_s2, 256, %s27_s19, [#allocation5]  }
  0x12   :  { %194 = dma.done.wait [#allocation5], 256  }
  0x13   :  { %195 = vsyncadd [#allocation5], 4294967040  ;;  %v40_v0 = vstv %s298_s0  ;;  %v37_v1 = vstv %s299_s1  ;;  %v35_v2 = vld [vmem:[#allocation4] sm:$0xff]  ;;  %v36_v3 = vld [vmem:[#allocation4 + $0x8] sm:$0xff]  ;;  %s201_s9 = smov [#allocation7]   ;;  %s202_s11 = smov [#allocation8]  }
  0x14   :  { %104 = vrcp.f32 %v40_v0  ;;  %v38_v4 = vsub.f32 %v35_v2, %v37_v1  ;;  %v39_v5 = vsub.f32 %v36_v3, %v37_v1  ;;  %s62_s10 = sshll.u32 %s201_s9, 4  ;;  %s72_s2 = sshll.u32 %s202_s11, 4  ;;  %s63_s10 = int_to_ptr.vmem [resolvable:$true] %s62_s10  ;;  %s252_s2 = int_to_ptr.vmem [resolvable:$true] %s72_s2 }
  0x15   :  { %s203_s0 = smov [#allocation10]   ;;  %s128_s12 = scalar_lea.vmem %s63_s10, 256 }
  0x16   :  { %s254_s1 = sshll.u32 %s203_s0, 4  ;;  %p129_p8 = scmp.ne.s32.totalorder %s63_s10, %s128_s12  ;;  %s83_s1 = int_to_ptr.vmem [resolvable:$true] %s254_s1 }
  0x17   :  { %p133_p9 = scmp.lt.s32.totalorder %s63_s10, %s63_s10  ;;  %p134_p10 = scmp.lt.s32.totalorder %s128_s12, %s128_s12 }
  0x19   :  { %p135_p11 = por %p134_p10, %p133_p9 }
  0x1b   :  { %p136_p12 = pnand %p135_p11, %p129_p8 }
  0x1e   :  { %v105_v6 = vpop.eup %104 }
  0x1f   :  { %v42_v7 = vmul.f32 %v105_v6, %v38_v4  ;;  %v43_v8 = vmul.f32 %v105_v6, %v39_v5 }
  0x21   :  { %v98_v9 = vround.rtne.f32 %v42_v7  ;;  %50 = vst [vmem:[#allocation7] sm:$0xff] %v42_v7  ;;  %v99_v10 = vround.rtne.f32 %v43_v8  ;;  %51 = vst [vmem:[#allocation7 + $0x8] sm:$0xff] %v43_v8 }
  0x22   :  { %139 = shalt.err (!%p136_p12)
}
  0x23   :  { %s140_s15 = scalar_lea.hbm %s301_s3, 256 }
  0x24   :  { %p141_p13 = scmp.ne.s32.totalorder %s301_s3, %s140_s15  ;;  %p144_p0 = scmp.lt.u32.totalorder %s140_s15, %s301_s3 }
  0x26   :  { %p146_p1 = pnand %p144_p0, %p141_p13 }
  0x28   :  { %149 = shalt.err (!%p146_p1)
}
  0x29   :  { %65 = dma.vmem_to_hbm [thread:$0]  %s63_s10, 256, %s301_s3, [#allocation6]   ;;  %52 = vst [vmem:[#allocation8] sm:$0xff] %v98_v9  ;;  %53 = vst [vmem:[#allocation8 + $0x8] sm:$0xff] %v99_v10  ;;  %v46_v11 = vmul.f32 %v98_v9, %v40_v0  ;;  %v47_v12 = vmul.f32 %v99_v10, %v40_v0 }
  0x2a   :  { %s150_s22 = scalar_lea.vmem %s252_s2, 256  ;;  %p155_p3 = scmp.lt.s32.totalorder %s252_s2, %s252_s2 }
  0x2b   :  { %p151_p2 = scmp.ne.s32.totalorder %s252_s2, %s150_s22  ;;  %p156_p4 = scmp.lt.s32.totalorder %s150_s22, %s150_s22 }
  0x2d   :  { %p157_p5 = por %p156_p4, %p155_p3 }
  0x2f   :  { %p158_p6 = pnand %p157_p5, %p151_p2 }
  0x31   :  { %161 = shalt.err (!%p158_p6)
}
  0x32   :  { %s162_s25 = scalar_lea.hbm %s302_s4, 256 }
  0x33   :  { %p163_p7 = scmp.ne.s32.totalorder %s302_s4, %s162_s25  ;;  %p166_p8 = scmp.lt.u32.totalorder %s162_s25, %s302_s4 }
  0x35   :  { %p168_p9 = pnand %p166_p8, %p163_p7 }
  0x37   :  { %171 = shalt.err (!%p168_p9)
}
  0x38   :  { %75 = dma.vmem_to_hbm [thread:$0]  %s252_s2, 256, %s302_s4, [#allocation9]   ;;  %v48_v13 = vadd.f32 %v46_v11, %v37_v1  ;;  %v49_v14 = vadd.f32 %v47_v12, %v37_v1 }
  0x39   :  { %s172_s6 = scalar_lea.vmem %s83_s1, 256  ;;  %p177_p11 = scmp.lt.s32.totalorder %s83_s1, %s83_s1 }
  0x3a   :  { %54 = vst [vmem:[#allocation10] sm:$0xff] %v48_v13  ;;  %55 = vst [vmem:[#allocation10 + $0x8] sm:$0xff] %v49_v14  ;;  %p173_p10 = scmp.ne.s32.totalorder %s83_s1, %s172_s6  ;;  %p178_p12 = scmp.lt.s32.totalorder %s172_s6, %s172_s6 }
  0x3c   :  { %p179_p13 = por %p178_p12, %p177_p11 }
  0x3e   :  { %p180_p0 = pnand %p179_p13, %p173_p10 }
  0x40   :  { %183 = shalt.err (!%p180_p0)
}
  0x41   :  { %s184_s9 = scalar_lea.hbm %s303_s5, 256 }
  0x42   :  { %p185_p1 = scmp.ne.s32.totalorder %s303_s5, %s184_s9  ;;  %p188_p2 = scmp.lt.u32.totalorder %s184_s9, %s303_s5 }
  0x44   :  { %p190_p3 = pnand %p188_p2, %p185_p1 }
  0x46   :  { %193 = shalt.err (!%p190_p3)
}
  0x47   :  { %85 = dma.vmem_to_hbm [thread:$0]  %s83_s1, 256, %s303_s5, [#allocation9]  }
  0x48   :  { %196 = dma.done.wait [#allocation6], 256  }
  0x49   :  { %197 = vsyncadd [#allocation6], 4294967040 }
  0x4a   :  { %198 = dma.done.wait [#allocation9], 512  }
  0x4b   :  { %199 = vsyncadd [#allocation9], 4294966784 }
  0x4c   :  { %95 = vsyncpa [#allocation5], 1 }
  0x4d   :  { %96 = vsyncpa [#allocation6], 1 }
  0x4e   :  { %97 = vsyncpa [#allocation9], 1 }

</bundles_post_ra>
